<compile_context>
chip_gen: v7x
topology: tpu7x:2x2x1
jax: 0.10.0
libtpu: 0.0.40
codegen_flags: <defaults>
</compile_context>

<pallas_src>
import functools

import jax
import jax.numpy as jnp
from jax import lax
from jax.experimental import pallas as pl
from jax.experimental.pallas import tpu as pltpu


def _round_up(x, m):
    return ((x + m - 1) // m) * m


def _attn_kernel(l_ref, g_ref, w_ref, b_ref, c_ref, gout_ref, *,
                 normalize_attn, inv_s):
    # l_ref:    (nb, C, S)  feature maps, native dtype, S = W*H on lanes
    # g_ref:    (nb, 1, C)  global descriptor, C on lanes
    # w_ref:    (1, 1, C)   1x1 conv weight (C -> 1), native dtype
    # b_ref:    (1, 1) SMEM conv bias scalar (f32)
    # c_ref:    (nb, 1, S)  attention logits output (pre-softmax/sigmoid)
    # gout_ref: (nb, 1, C)  pooled descriptor output
    l = l_ref[...]                                   # native dtype -> MXU operand
    w = w_ref[...]
    nb = l.shape[0]
    bias = b_ref[0, 0]

    # 1x1 conv over channels on the MXU (batched NN matmul):
    #   logits[b, 0, s] = sum_c w[c] * l[b, c, s]
    w_b = jnp.broadcast_to(w, (nb, 1, w.shape[-1]))
    logits = lax.dot_general(w_b, l, (((2,), (1,)), ((0,), (0,))),
                             preferred_element_type=jnp.float32)      # (nb,1,S) f32

    # Folded global-descriptor term: w.(l + g) = w.l + w.g  (no (C,S) broadcast add).
    wg = jnp.sum(g_ref[...].astype(jnp.float32) * w.astype(jnp.float32),
                 axis=-1, keepdims=True)                               # (nb,1,1)
    logits = logits + (wg + bias)
    c_ref[...] = logits.astype(c_ref.dtype)          # one dense (nb,1,S) block store

    if normalize_attn:
        m = jnp.max(logits, axis=-1, keepdims=True)
        e = jnp.exp(logits - m)                       # f32, EUP
        denom = jnp.sum(e, axis=-1, keepdims=True)    # (nb,1,1)
        p = e.astype(l.dtype)                         # cast before the MXU (flash-attn style)
        scale = 1.0 / denom                           # exact; applied to the tiny pooled row
    else:
        p = jax.nn.sigmoid(logits).astype(l.dtype)
        scale = inv_s                                 # mean over the true spatial size

    # Spatial pooling on the MXU (batched NT matmul, q@k^T orientation — no big transpose):
    #   pooled[b, 0, c] = sum_s p[b, 0, s] * l[b, c, s]
    pooled = lax.dot_general(p, l, (((2,), (2,)), ((0,), (0,))),
                             preferred_element_type=jnp.float32)       # (nb,1,C) f32
    gout_ref[...] = (pooled * scale).astype(gout_ref.dtype)


def linear_attention_block(l_nchw, g_vec, weight, bias, *, normalize_attn=True):
    N, C, W, H = l_nchw.shape
    S = W * H
    dtype = l_nchw.dtype
    itemsize = jnp.dtype(dtype).itemsize

    # ---- generation-aware tile selection -------------------------------------------
    try:
        vmem_cap = int(pltpu.get_tpu_info().vmem_capacity_bytes)
        if vmem_cap <= 0:
            raise ValueError("bad vmem capacity")
    except Exception:
        vmem_cap = 128 * 1024 * 1024
    budget = min(vmem_cap // 2, 64 * 1024 * 1024)     # v7x: ~32 MiB, v5e/v6e: 64 MiB

    sub = {1: 32, 2: 16, 4: 8}.get(itemsize, 8)       # sublane packing for the dtype

    def _vmem_est(nb_):
        s_pad = _round_up(S, 128)
        c_lane = _round_up(C, 128)
        c_sub = _round_up(C, sub)
        l_blk = nb_ * c_sub * s_pad * itemsize        # (nb, C, S) input block
        c_blk = nb_ * sub * s_pad * itemsize          # (nb, 1, S) output block
        g_blk = nb_ * sub * c_lane * itemsize         # (nb, 1, C) input block
        go_blk = nb_ * sub * c_lane * itemsize        # (nb, 1, C) output block
        w_blk = sub * c_lane * itemsize
        return 2 * (l_blk + c_blk + g_blk + go_blk + w_blk) + (1 << 20)  # double-buffered

    per_batch_l = max(C * S * itemsize, 1)
    nb = max(1, min(N, (4 << 20) // per_batch_l))     # target ~4 MiB of l per grid step
    nb = min(nb, 64)
    if N >= 2:
        nb = min(nb, (N + 1) // 2)                    # grid >= 2: keep both v7x TCs busy
    while nb > 1 and _vmem_est(nb) > budget:
        nb -= 1
    # TODO(synk): if even nb == 1 exceeds the VMEM budget (very large C*S), tile S on a
    # second "arbitrary" grid axis with an online softmax + accumulated pooled row.

    grid = (pl.cdiv(N, nb),)
    vmem_limit = int(min(vmem_cap * 3 // 4,
                         max(32 * 1024 * 1024, _vmem_est(nb) + (16 << 20))))

    # ---- operand packaging (no copy of l: reshape only) -----------------------------
    l3 = l_nchw.reshape(N, C, S)                              # (N, C, S), free reshape
    g3 = g_vec.reshape(N, 1, C).astype(dtype)                 # (N, 1, C), tiny
    w3 = weight.reshape(1, 1, C).astype(dtype)                # (1, 1, C), tiny
    b2 = bias.reshape(1, 1).astype(jnp.float32)               # SMEM scalar

    kernel = functools.partial(_attn_kernel, normalize_attn=normalize_attn,
                               inv_s=1.0 / S)

    c_flat, g_out = pl.pallas_call(
        kernel,
        out_shape=(
            jax.ShapeDtypeStruct((N, 1, S), dtype),   # attention logits, S on lanes
            jax.ShapeDtypeStruct((N, 1, C), dtype),   # pooled descriptor, C on lanes
        ),
        grid=grid,
        in_specs=[
            pl.BlockSpec((nb, C, S), lambda n: (n, 0, 0)),    # l tile (nb batches)
            pl.BlockSpec((nb, 1, C), lambda n: (n, 0, 0)),    # g tile
            pl.BlockSpec((1, 1, C), lambda n: (0, 0, 0)),     # conv weight (shared)
            pl.BlockSpec(memory_space=pltpu.MemorySpace.SMEM),  # bias scalar
        ],
        out_specs=(
            pl.BlockSpec((nb, 1, S), lambda n: (n, 0, 0)),
            pl.BlockSpec((nb, 1, C), lambda n: (n, 0, 0)),
        ),
        compiler_params=pltpu.CompilerParams(
            dimension_semantics=("parallel",),        # batch-tile axis -> both TCs on v7x
            vmem_limit_bytes=vmem_limit,
        ),
    )(l3, g3, w3, b2)

    c_out = c_flat.reshape(N, 1, W, H)
    g_out = g_out.reshape(N, C)
    return c_out, g_out


def _reference(l, g, w, b, normalize_attn=True):
    # Pure-JAX mirror of the PyTorch forward for correctness checking.
    N, C, W, H = l.shape
    x = l + g[:, :, None, None]
    c = jnp.einsum("nchw,c->nhw", x, w)[:, None, :, :] + b[0]
    if normalize_attn:
        a = jax.nn.softmax(c.reshape(N, 1, -1), axis=2).reshape(N, 1, W, H)
        gout = (a * l).reshape(N, C, -1).sum(axis=2)
    else:
        a = jax.nn.sigmoid(c)
        gout = (a * l).mean(axis=(2, 3))
    return c, gout


if __name__ == "__main__":
    # Small shapes consistent with the module: l is (N, C, W, H), g is (N, C).
    N, C, W, H = 2, 4, 16, 16
    key = jax.random.PRNGKey(0)
    k_l, k_g, k_w, k_b = jax.random.split(key, 4)

    l = jax.random.normal(k_l, (N, C, W, H), dtype=jnp.float32)
    g = jax.random.normal(k_g, (N, C), dtype=jnp.float32)
    # Deterministic 1x1 Conv2d(C -> 1) parameters (synthetic init).
    weight = 0.1 * jax.random.normal(k_w, (C,), dtype=jnp.float32)
    bias = 0.05 * jax.random.normal(k_b, (1,), dtype=jnp.float32)

    for norm in (True, False):
        c_out, g_out = linear_attention_block(l, g, weight, bias, normalize_attn=norm)
        jax.block_until_ready((c_out, g_out))
        c_exp, g_exp = _reference(l, g, weight, bias, normalize_attn=norm)
        assert c_out.shape == (N, 1, W, H) and g_out.shape == (N, C)
        assert jnp.allclose(c_out, c_exp, atol=1e-4, rtol=1e-4), \
            f"attention-map mismatch (normalize_attn={norm})"
        assert jnp.allclose(g_out, g_exp, atol=2e-3, rtol=2e-3), \
            f"pooled-descriptor mismatch (normalize_attn={norm})"

    print("KERNEL_OK")
</pallas_src>

<mosaic_0001>
module attributes {stable_mosaic.version = 11 : i64} {
  func.func @_attn_kernel(%arg0: i32, %arg1: memref<1x4x256xf32, #tpu.memory_space<vmem>>, %arg2: memref<1x1x4xf32, #tpu.memory_space<vmem>>, %arg3: memref<1x1x4xf32, #tpu.memory_space<vmem>>, %arg4: memref<1x1xf32, #tpu.memory_space<smem>>, %arg5: memref<1x1x256xf32, #tpu.memory_space<vmem>>, %arg6: memref<1x1x4xf32, #tpu.memory_space<vmem>>) attributes {dimension_semantics = [#tpu.dimension_semantics<parallel>], iteration_bounds = array<i64: 2>, scalar_prefetch = 0 : i64, scratch_operands = 0 : i64, tpu.core_type = #tpu.core_type<tc>, window_params = [{transform_indices = @transform_0, window_bounds = array<i64: 1, 4, 256>}, {transform_indices = @transform_1, window_bounds = array<i64: 1, 1, 4>}, {pipeline_mode = #tpu.pipeline_mode<synchronous>, transform_indices = @transform_2, window_bounds = array<i64: 1, 1, 4>}, {transform_indices = @transform_3, window_bounds = array<i64: 1, 1>}, {transform_indices = @transform_4, window_bounds = array<i64: 1, 1, 256>}, {transform_indices = @transform_5, window_bounds = array<i64: 1, 1, 4>}]} {
    %c0 = arith.constant 0 : index
    %c0_0 = arith.constant 0 : index
    %c0_1 = arith.constant 0 : index
    %0 = vector.load %arg1[%c0, %c0_0, %c0_1] : memref<1x4x256xf32, #tpu.memory_space<vmem>>, vector<1x4x256xf32>
    %c0_2 = arith.constant 0 : index
    %c0_3 = arith.constant 0 : index
    %c0_4 = arith.constant 0 : index
    %1 = vector.load %arg3[%c0_2, %c0_3, %c0_4] : memref<1x1x4xf32, #tpu.memory_space<vmem>>, vector<1x1x4xf32>
    %c0_5 = arith.constant 0 : index
    %c0_6 = arith.constant 0 : index
    %2 = memref.load %arg4[%c0_5, %c0_6] : memref<1x1xf32, #tpu.memory_space<smem>>
    %cst = arith.constant dense<0.000000e+00> : vector<1x1x256xf32>
    %3 = tpu.matmul %1, %0, %cst {dimension_numbers = #tpu.dot_dimension_numbers<[2], [1], [1], [2], [0, 0, 0, 1, 1, 2], [0], [0]>} : vector<1x1x4xf32>, vector<1x4x256xf32>, vector<1x1x256xf32> -> vector<1x1x256xf32>
    %c0_7 = arith.constant 0 : index
    %c0_8 = arith.constant 0 : index
    %c0_9 = arith.constant 0 : index
    %4 = vector.load %arg2[%c0_7, %c0_8, %c0_9] : memref<1x1x4xf32, #tpu.memory_space<vmem>>, vector<1x1x4xf32>
    %5 = arith.mulf %4, %1 : vector<1x1x4xf32>
    %cst_10 = arith.constant dense<0.000000e+00> : vector<1x1xf32>
    %6 = vector.multi_reduction <add>, %5, %cst_10 [2] : vector<1x1x4xf32> to vector<1x1xf32>
    %7 = vector.shape_cast %6 : vector<1x1xf32> to vector<1x1x1xf32>
    %8 = vector.broadcast %2 : f32 to vector<1x1x1xf32>
    %9 = arith.addf %7, %8 : vector<1x1x1xf32>
    %10 = vector.broadcast %9 : vector<1x1x1xf32> to vector<1x1x256xf32>
    %11 = arith.addf %3, %10 : vector<1x1x256xf32>
    %c0_11 = arith.constant 0 : index
    %c0_12 = arith.constant 0 : index
    %c0_13 = arith.constant 0 : index
    %12 = vector.load %arg5[%c0_11, %c0_12, %c0_13] : memref<1x1x256xf32, #tpu.memory_space<vmem>>, vector<1x1x256xf32>
    tpu.vector_store %arg5[%c0_11, %c0_12, %c0_13], %11 {strides = array<i32>} : memref<1x1x256xf32, #tpu.memory_space<vmem>>, vector<1x1x256xf32>,
    %cst_14 = arith.constant dense<0xFF800000> : vector<1x1xf32>
    %13 = vector.multi_reduction <maximumf>, %11, %cst_14 [2] : vector<1x1x256xf32> to vector<1x1xf32>
    %14 = vector.shape_cast %13 : vector<1x1xf32> to vector<1x1x1xf32>
    %15 = vector.broadcast %14 : vector<1x1x1xf32> to vector<1x1x256xf32>
    %16 = arith.subf %11, %15 : vector<1x1x256xf32>
    %17 = math.exp %16 : vector<1x1x256xf32>
    %cst_15 = arith.constant dense<0.000000e+00> : vector<1x1xf32>
    %18 = vector.multi_reduction <add>, %17, %cst_15 [2] : vector<1x1x256xf32> to vector<1x1xf32>
    %19 = vector.shape_cast %18 : vector<1x1xf32> to vector<1x1x1xf32>
    %cst_16 = arith.constant 1.000000e+00 : f32
    %20 = vector.broadcast %cst_16 : f32 to vector<1x1x1xf32>
    %21 = arith.divf %20, %19 : vector<1x1x1xf32>
    %cst_17 = arith.constant dense<0.000000e+00> : vector<1x1x4xf32>
    %22 = tpu.matmul %17, %0, %cst_17 {dimension_numbers = #tpu.dot_dimension_numbers<[2], [2], [1], [1], [0, 0, 0, 1, 1, 1], [0], [0]>} : vector<1x1x256xf32>, vector<1x4x256xf32>, vector<1x1x4xf32> -> vector<1x1x4xf32>
    %23 = vector.broadcast %21 : vector<1x1x1xf32> to vector<1x1x4xf32>
    %24 = arith.mulf %22, %23 : vector<1x1x4xf32>
    %c0_18 = arith.constant 0 : index
    %c0_19 = arith.constant 0 : index
    %c0_20 = arith.constant 0 : index
    %25 = vector.load %arg6[%c0_18, %c0_19, %c0_20] : memref<1x1x4xf32, #tpu.memory_space<vmem>>, vector<1x1x4xf32>
    tpu.vector_store %arg6[%c0_18, %c0_19, %c0_20], %24 {strides = array<i32>} : memref<1x1x4xf32, #tpu.memory_space<vmem>>, vector<1x1x4xf32>,
    return
  }
  func.func @transform_0(%arg0: i32) -> (i32, i32, i32) {
    %c0_i32 = arith.constant 0 : i32
    %c0_i32_0 = arith.constant 0 : i32
    %c0_i32_1 = arith.constant 0 : i32
    return %arg0, %c0_i32, %c0_i32_0 : i32, i32, i32
  }
  func.func @transform_1(%arg0: i32) -> (i32, i32, i32) {
    %c0_i32 = arith.constant 0 : i32
    %c0_i32_0 = arith.constant 0 : i32
    %c0_i32_1 = arith.constant 0 : i32
    return %arg0, %c0_i32, %c0_i32_0 : i32, i32, i32
  }
  func.func @transform_2(%arg0: i32) -> (i32, i32, i32) {
    %c0_i32 = arith.constant 0 : i32
    %c0_i32_0 = arith.constant 0 : i32
    %c0_i32_1 = arith.constant 0 : i32
    %c0_i32_2 = arith.constant 0 : i32
    return %c0_i32, %c0_i32_0, %c0_i32_1 : i32, i32, i32
  }
  func.func @transform_3(%arg0: i32) -> (i32, i32) {
    %c0_i32 = arith.constant 0 : i32
    %c0_i32_0 = arith.constant 0 : i32
    %c0_i32_1 = arith.constant 0 : i32
    return %c0_i32, %c0_i32_0 : i32, i32
  }
  func.func @transform_4(%arg0: i32) -> (i32, i32, i32) {
    %c0_i32 = arith.constant 0 : i32
    %c0_i32_0 = arith.constant 0 : i32
    %c0_i32_1 = arith.constant 0 : i32
    return %arg0, %c0_i32, %c0_i32_0 : i32, i32, i32
  }
  func.func @transform_5(%arg0: i32) -> (i32, i32, i32) {
    %c0_i32 = arith.constant 0 : i32
    %c0_i32_0 = arith.constant 0 : i32
    %c0_i32_1 = arith.constant 0 : i32
    return %arg0, %c0_i32, %c0_i32_0 : i32, i32, i32
  }
}

</mosaic_0001>

<bundles_post_ra>
// kernel: tpu_custom_call.1
= control target key start
LH: loop header
LB: loop body
LE: loop exit
PB: predicated region body
PF: predicated region fallthrough
CT: control target
= control target key end

     0   :  { %s1062_s0 = inlined_call_operand.hbm [shape: f32[2,4,256], index: 0, kind: input, shape index: {}]   ;;  %s1063_s1 = inlined_call_operand.vmem [shape: f32[2,1,4], index: 1, kind: input, shape index: {}]   ;;  %s1064_s2 = inlined_call_operand.vmem [shape: f32[1,1,4], index: 2, kind: input, shape index: {}]   ;;  %s1065_s3 = inlined_call_operand.<no memory space> [shape: f32[1,1], index: 3, kind: input, shape index: {}]   ;;  %s1066_s4 = inlined_call_operand.hbm [shape: f32[2,1,256], index: 4, kind: output, shape index: {0}]   ;;  %s1067_s5 = inlined_call_operand.hbm [shape: f32[2,1,4], index: 5, kind: output, shape index: {1}]  }
   0x1   :  { %11 = sst [smem:[#allocation2]] %s1065_s3 }
   0x2   :  { %12 = vsyncpa [#allocation4], 0 }
   0x3   :  { %14 = vsyncpa [#allocation4 + $0x1], 0 }
   0x4   :  { %15 = vsyncpa [#allocation5], 0 }
   0x5   :  { %17 = vsyncpa [#allocation5 + $0x1], 0 }
   0x6   :  { %18 = vsyncpa [#allocation8], 0 }
   0x7   :  { %20 = vsyncpa [#allocation8 + $0x1], 0  ;;  %s861_s20 = smov 0   ;;  %s863_s21 = smov 0  }
   0x8   :  { %s865_s22 = smov 0   ;;  %s867_s23 = smov 0  }
   0x9 LB: > { %s882_s3 = sadd.s32 4294967295, %s821_s23   ;;  %s613_s24 = sadd.s32 4294967294, %s821_s23   ;;  %s821_s23 = sphi %s867_s23, %s1082_s23   ;;  %s817_s22 = sphi %s865_s22, %s1081_s22   ;;  %s813_s21 = sphi %s863_s21, %s1080_s21   ;;  %s809_s20 = sphi %s861_s20, %s1079_s20  }
   0xa   : > { %s886_s25 = sadd.s32 1, %s821_s23   ;;  %s33_s26 = sadd.s32 1, %s817_s22 }
   0xb   : > { %s30_s27 = ssub.s32 %s821_s23, %s886_s25  ;;  %p40_p0 = scmp.ne.s32.totalorder %s817_s22, %s813_s21 }
   0xc   : > { %p31_p1 = scmp.eq.s32.totalorder %s30_s27, 0  ;;  %p41_p2 = scmp.eq.s32.totalorder %s821_s23, 0 }
   0xd   : > { %p46_p3 = scmp.ne.s32.totalorder %s813_s21, %s809_s20  ;;  %p47_p4 = scmp.eq.s32.totalorder %s882_s3, 0 }
   0xe   : > { %s898_s28 = scalar_select %p31_p1, %s817_s22, %s33_s26  }
   0xf   : > { %p900_p5 = por %p41_p2, %p40_p0  ;;  %p904_p6 = por %p47_p4, %p46_p3 }
  0x10   : > { %p138_p7 = scmp.eq.s32.totalorder %s882_s3, 1  ;;  %p144_p8 = scmp.eq.s32.totalorder %s613_s24, 1 }
  0x11   : > { %p650_p10 = scmp.lt.s32.totalorder %s821_s23, 2  ;;  %s196_s8 = sand.u32 1, %s817_s22  }
  0x12   : > { %p911_p11 = por %p138_p7, %p40_p0  ;;  %p915_p12 = por %p144_p8, %p46_p3 }
  0x13   : > { %s631_s9 = sshll.u32 %s821_s23, 7  ;;  %s616_s10 = sshll.u32 %s196_s8, 3 }
  0x14   : > { %s1071_s6 = scalar_select %p911_p11, 1, 0 }
  0x15   : > { %s1072_s7 = scalar_select %p915_p12, 1, 0 }
  0x16   : > { %s924_s13 = scalar_lea.hbm %s1062_s0, %s631_s9  ;;  %s200_s14 = scalar_lea.vmem [#allocation3], %s616_s10 }
  0x17   : > { %s208_s15 = sshll.u32 %s200_s14, 4  ;;  %p928_p13 = pnand %p650_p10, %p900_p5  ;;  %s932_s15 = int_to_ptr.vmem [resolvable:$true] %s208_s15 }
  0x18   : > { %s197_s17 = scalar_lea.sflag [#allocation4], %s196_s8  ;;  %s693_s18 = scalar_lea.hbm %s924_s13, 128 }
  0x19   : > { %p694_p2 = scmp.ne.s32.totalorder %s924_s13, %s693_s18  ;;  %p695_p3 = pneg %p928_p13 }
  0x1a   : > { %s698_s26 = scalar_lea.hbm %s1062_s0, 256  ;;  %p699_p5 = scmp.lt.u32.totalorder %s924_s13, %s1062_s0 }
  0x1b   : > { %p696_p4 = pnand %p695_p3, %p694_p2  ;;  %p700_p8 = scmp.lt.u32.totalorder %s698_s26, %s693_s18 }
  0x1c   : > { %p702_p9 = scmp.lt.u32.totalorder %s693_s18, %s924_s13 }
  0x1d   : > { %p697_p7 = pneg %p696_p4  ;;  %p701_p10 = por %p700_p8, %p699_p5 }
  0x1f   : > { %p703_p0 = por %p702_p9, %p701_p10 }
  0x21   : > { %p704_p1 = pnand %p703_p0, %p697_p7 }
  0x23   : > { %707 = shalt.err (!%p704_p1)
}
  0x24   : > { %s708_s8 = scalar_lea.vmem %s932_s15, 128  ;;  %s823_s9 = smov [#allocation3]  }
  0x25   : > { %p709_p2 = scmp.ne.s32.totalorder %s932_s15, %s708_s8  ;;  %s713_s10 = sshll.u32 %s823_s9, 4  ;;  %s714_s10 = int_to_ptr.vmem [resolvable:$false] %s713_s10 }
  0x26   : > { %s715_s11 = scalar_lea.vmem %s714_s10, 256  ;;  %p716_p11 = scmp.lt.s32.totalorder %s932_s15, %s714_s10 }
  0x27   : > { %p711_p4 = pnand %p709_p2, %p695_p3  ;;  %p717_p5 = scmp.lt.s32.totalorder %s715_s11, %s708_s8 }
  0x29   : > { %p712_p12 = pneg %p711_p4  ;;  %p718_p8 = por %p717_p5, %p716_p11 }
  0x2b   : > { %p719_p9 = pnand %p718_p8, %p712_p12 }
  0x2d   : > { %722 = shalt.err (!%p719_p9)
}
  0x2e   : > { %642 = dma.hbm_to_vmem [thread:$0]  (!%p928_p13), %s924_s13, 128, %s932_s15, %s197_s17  }
  0x2f   : > { %p1074_p0 = scmp.lt.s32.totalorder %s821_s23, 3  ;;  %p1075_p1 = scmp.ge.s32.totalorder %s821_s23, 1 }
  0x31   : > { %p220_p3 = pnand %p1075_p1, %p1074_p0 }
  0x32   : > { %s966_s12 = sand.u32 (!%p220_p3), 1, %s813_s21  }
  0x33   : > { %223 = sbr.rel (%p220_p3) target bundleno = 669 (0x29d), region = 36  ;;  %s620_s14 = sshll.u32 (!%p220_p3), %s966_s12, 3 }
  0x34   : > { %s226_s18 = scalar_lea.sflag (!%p220_p3), [#allocation4], %s966_s12  ;;  %s229_s19 = scalar_lea.vmem (!%p220_p3), [#allocation3], %s620_s14 }
  0x3a   : > { %796 = dma.done.wait (%p904_p6), %s226_s18, 128  }
  0x3b   : > { %798 = vsyncadd (%p904_p6), %s226_s18, 4294967168  ;;  %p263_p11 = scmp.lt.s32.totalorder %s882_s3, 1  ;;  %v824_v0 = vmov 0.0   ;;  %vm283_vm0 = vcmask 1043456   ;;  %v266_v1 = vld [vmem:[%s229_s19] sm:$0xff]  ;;  %vm271_vm1 = vcmask 24576   ;;  %v365_v11 = vlaneseq }
  0x3c   : > { %352 = vmatprep.mubr.f32.mxu0 %v824_v0  ;;  %v267_v2 = vld [vmem:[%s1064_s2] sm:$0x1]  ;;  %v278_v4 = vcombine.high %v266_v1, %v266_v1  ;;  %vm279_vm2 = vcmask 31744   ;;  %s268_s30 = sld [smem:[#allocation2]]  ;;  %v825_v9 = vmov 1966171168  }
  0x3d   : > { %s264_s13 = scalar_select %p263_p11, %s882_s3, 1  ;;  %v363_v10 = vunpack.c.l.s4 %v825_v9  ;;  %v366_v14 = vshrl.u32 %v365_v11, 7  ;;  %vm382_vm3 = vcmask 1040384   ;;  %vm379_vm4 = vcmp.lt.s32.totalorder %v365_v11, 256 }
  0x3e   : > { %622 = vmatprep.subr.msk.mxu0 %vm283_vm0, %v278_v4  ;;  %402 = vmatprep.subr.mxu1 %v278_v4  ;;  %s621_s27 = sshll.u32 %s966_s12, 1  ;;  %s632_s8 = sshll.u32 %s882_s3, 5 }
  0x3f   : > { %s265_s17 = scalar_lea.vmem %s1063_s1, %s264_s13  ;;  %623 = vmatpush1.msk.msra.mxu0 %vm283_vm0, %v266_v1  ;;  %403 = vmatpush1.xpose.msra.mxu1 %v266_v1  ;;  %v364_v13 = vunpack.c.0.s8 %v363_v10  ;;  %s256_s29 = scalar_lea.vmem [#allocation6], %s621_s27 }
  0x40   : > { %v269_v3 = vld [vmem:[%s265_s17] sm:$0x1]  ;;  %624 = vmatmul.mubr.msk.f32.vlgmr.msra.gmra.mrb[0].mxu0 %vm279_vm2, %v267_v2  ;;  %s992_s11 = scalar_lea.hbm %s1066_s4, %s632_s8  ;;  %s493_s14 = sshll.u32 %s256_s29, 4  ;;  %s494_s14 = int_to_ptr.vmem [resolvable:$true] %s493_s14 }
  0x41   : > { %v270_v5 = vmul.f32 %v269_v3, %v267_v2  ;;  %v367_v19 = vsub.s32 %v364_v13, %v366_v14  ;;  %s475_s18 = scalar_lea.sflag [#allocation5], %s966_s12  ;;  %s723_s19 = scalar_lea.vmem %s494_s14, 32 }
  0x42   : > { %v275_v7 = vstv %s268_s30  ;;  %p724_p6 = scmp.ne.s32.totalorder %s494_s14, %s723_s19  ;;  %p1076_p12 = scmp.ne.s32.totalorder %s1071_s6, 0 }
  0x43   : > { %v272_v6 = vsel %vm271_vm1, %v270_v5, 0.0  ;;  %s826_s13 = smov [#allocation6]  }
  0x44   : > { %273 = vadd.xlane.f32.xlu0 %v272_v6  ;;  %p725_p13 = pnand %p724_p6, %p1076_p12  ;;  %s727_s15 = sshll.u32 %s826_s13, 4  ;;  %s728_s15 = int_to_ptr.vmem [resolvable:$false] %s727_s15 }
  0x45   : > { %s729_s16 = scalar_lea.vmem %s728_s15, 64  ;;  %p730_p10 = scmp.lt.s32.totalorder %s494_s14, %s728_s15 }
  0x46   : > { %p726_p7 = pneg %p725_p13  ;;  %p731_p2 = scmp.lt.s32.totalorder %s729_s16, %s723_s19 }
  0x48   : > { %p732_p4 = por %p731_p2, %p730_p10 }
  0x4a   : > { %p733_p5 = pnand %p732_p4, %p726_p7 }
  0xd1   : > { %v274_v8 = vpop.xlane.xlu0 %273 }
  0xd2   : > { %v276_v12 = vadd.f32 %v275_v7, %v274_v8 }
 0x113   : > { %v354_v15 = vpop.f32.mrb[0].mxu0 }
 0x114   : > { %v355_v16 = vadd.f32 %v354_v15, %v276_v12  ;;  %v356_v17 = vpop.f32.mrb[1].mxu0 }
 0x115   : > { %v357_v18 = vadd.f32 %v356_v17, %v276_v12 }
 0x116   : > { %v383_v20 = vsel %vm382_vm3, %v355_v16, -inf }
 0x117   : > { %v361_v21 = vcombine.low %v355_v16, %v357_v18  ;;  %v384_v22 = vsel %vm382_vm3, %v357_v18, -inf }
 0x118   : > { %v385_v23 = vmax.f32 %v383_v20, %v384_v22 }
 0x119   : > { %v368_v24 = vrot.slane %v361_v21, %v367_v19 }
 0x11a   : > { %386 = vmax.xlane.f32.xlu0 %v385_v23 }
 0x11b   : > { %v375_v25 = vrot.slane %v368_v24, %v367_v19 }
 0x11d   : > { %381 = vst.msk [vmem:[%s256_s29] sm:$0x3] %vm379_vm4, %v375_v25 }
 0x1a7   : > { %v387_v26 = vpop.xlane.xlu0 %386 }
 0x1a8   : > { %v388_v27 = vsub.f32 %v355_v16, %v387_v26  ;;  %v389_v28 = vsub.f32 %v357_v18, %v387_v26 }
 0x1aa   : > { %v390_v29 = vmul.f32 1.442695, %v388_v27  ;;  %v392_v30 = vmul.f32 1.442695, %v389_v28 }
 0x1ac   : > { %687 = vpow2.f32 %v390_v29 }
 0x1ad   : > { %689 = vpow2.f32 %v392_v30 }
 0x1b6   : > { %v688_v31 = vpop.eup %687 }
 0x1b7   : > { %v690_v32 = vpop.eup %689  ;;  %v394_v33 = vsel %vm382_vm3, %v688_v31, 0.0 }
 0x1b8   : > { %466 = vmatprep.mubr.f32.mxu1 %v690_v32  ;;  %v395_v34 = vsel %vm382_vm3, %v690_v32, 0.0 }
 0x1b9   : > { %467 = vmatmul.mubr.f32.vlgmr.msra.gmra.mrb[0].mxu1 %v688_v31  ;;  %v396_v35 = vadd.f32 %v395_v34, %v394_v33 }
 0x1bb   : > { %397 = vadd.xlane.f32.xlu1 %v396_v35 }
 0x1bc   : > { %736 = shalt.err (!%p733_p5)
}
 0x1bd   : > { %s737_s17 = scalar_lea.hbm %s992_s11, 32  ;;  %s741_s30 = scalar_lea.hbm %s1066_s4, 64 }
 0x1be   : > { %p738_p8 = scmp.ne.s32.totalorder %s992_s11, %s737_s17  ;;  %p742_p1 = scmp.lt.u32.totalorder %s992_s11, %s1066_s4 }
 0x1bf   : > { %p743_p3 = scmp.lt.u32.totalorder %s741_s30, %s737_s17  ;;  %p745_p6 = scmp.lt.u32.totalorder %s737_s17, %s992_s11 }
 0x1c0   : > { %p739_p9 = pnand %p738_p8, %p1076_p12 }
 0x1c1   : > { %p744_p11 = por %p743_p3, %p742_p1 }
 0x1c2   : > { %p740_p0 = pneg %p739_p9 }
 0x1c3   : > { %p746_p13 = por %p745_p6, %p744_p11 }
 0x1c5   : > { %p747_p7 = pnand %p746_p13, %p740_p0 }
 0x1c7   : > { %750 = shalt.err (!%p747_p7)
}
 0x1c8   : > { %635 = dma.vmem_to_hbm [thread:$0]  (%p1076_p12), %s494_s14, 32, %s992_s11, %s475_s18  }
 0x1c9   : > { %s628_s8 = sshll.u32 %s882_s3, 4  ;;  %s262_s9 = scalar_lea.vmem [#allocation7], %s966_s12 }
 0x1ca   : > { %s506_s10 = sshll.u32 %s262_s9, 4  ;;  %s1017_s15 = scalar_lea.hbm %s1067_s5, %s628_s8  ;;  %s1019_s10 = int_to_ptr.vmem [resolvable:$true] %s506_s10 }
 0x1cb   : > { %s480_s11 = scalar_lea.sflag [#allocation8], %s966_s12  ;;  %s751_s3 = scalar_lea.vmem %s1019_s10, 16 }
 0x1cc   : > { %p752_p10 = scmp.ne.s32.totalorder %s1019_s10, %s751_s3  ;;  %s827_s14 = smov [#allocation7]  }
 0x1cd   : > { %s755_s18 = sshll.u32 %s827_s14, 4  ;;  %s756_s18 = int_to_ptr.vmem [resolvable:$false] %s755_s18 }
 0x1ce   : > { %p753_p2 = pnand %p752_p10, %p1076_p12  ;;  %s757_s16 = scalar_lea.vmem %s756_s18, 32 }
 0x1cf   : > { %p758_p5 = scmp.lt.s32.totalorder %s1019_s10, %s756_s18  ;;  %p759_p8 = scmp.lt.s32.totalorder %s757_s16, %s751_s3 }
 0x1d0   : > { %p754_p4 = pneg %p753_p2 }
 0x1d1   : > { %p760_p9 = por %p759_p8, %p758_p5 }
 0x1d3   : > { %p761_p0 = pnand %p760_p9, %p754_p4 }
 0x248   : > { %v398_v36 = vpop.xlane.xlu1 %397 }
 0x249   : > { %691 = vrcp.f32 %v398_v36 }
 0x253   : > { %v692_v37 = vpop.eup %691 }
 0x28c   : > { %v468_v38 = vpop.f32.mrb[0].mxu1 }
 0x28d   : > { %v472_v39 = vmul.f32 %v692_v37, %v468_v38  ;;  %v470_v40 = vpop.f32.mrb[1].mxu1 }
 0x28f   : > { %473 = vst.msk [vmem:[%s262_s9] sm:$0x1] %vm271_vm1, %v472_v39 }
 0x290   : > { %764 = shalt.err (!%p761_p0)
}
 0x291   : > { %s765_s12 = scalar_lea.hbm %s1017_s15, 16  ;;  %s769_s26 = scalar_lea.hbm %s1067_s5, 32 }
 0x292   : > { %p766_p1 = scmp.ne.s32.totalorder %s1017_s15, %s765_s12  ;;  %p770_p6 = scmp.lt.u32.totalorder %s1017_s15, %s1067_s5 }
 0x293   : > { %p771_p13 = scmp.lt.u32.totalorder %s769_s26, %s765_s12  ;;  %p773_p10 = scmp.lt.u32.totalorder %s765_s12, %s1017_s15 }
 0x294   : > { %p767_p3 = pnand %p766_p1, %p1076_p12 }
 0x295   : > { %p772_p7 = por %p771_p13, %p770_p6 }
 0x296   : > { %p768_p11 = pneg %p767_p3 }
 0x297   : > { %p774_p2 = por %p773_p10, %p772_p7 }
 0x299   : > { %p775_p4 = pnand %p774_p2, %p768_p11 }
 0x29b   : > { %778 = shalt.err (!%p775_p4)
}
 0x29c   : > { %636 = dma.vmem_to_hbm [thread:$0]  (%p1076_p12), %s1019_s10, 16, %s1017_s15, %s480_s11  }
 0x29d PF: > { %s518_s29 = sand.u32 1, %s809_s20   ;;  %p1077_p5 = scmp.ne.s32.totalorder %s1072_s7, 0 }
 0x29e   : > { %p1078_p8 = scmp.ge.s32.totalorder %s821_s23, 2  ;;  %s519_s8 = scalar_lea.sflag [#allocation5], %s518_s29 }
 0x2a0   : > { %p644_p9 = pnand %p1078_p8, %p1077_p5 }
 0x2a2   : > { %800 = dma.done.wait (!%p644_p9), %s519_s8, 32  }
 0x2a3   : > { %802 = vsyncadd (!%p644_p9), %s519_s8, 4294967264  ;;  %s528_s9 = scalar_lea.sflag [#allocation8], %s518_s29 }
 0x2a4   : > { %804 = dma.done.wait (!%p644_p9), %s528_s9, 16  }
 0x2a5   : > { %806 = vsyncadd (!%p644_p9), %s528_s9, 4294967280  ;;  %p23_p12 = scmp.ge.s32.totalorder %s886_s25, 4   ;;  %s1079_s20 = smov %s813_s21 }
 0x2a6   : > { %s1080_s21 = smov %s817_s22  ;;  %s1081_s22 = smov %s898_s28 }
 0x2a7   : > { %s1082_s23 = smov %s886_s25  ;;  %25 = sbr.rel (!%p23_p12) target bundleno = 9 (0x9), region = 101 }
 0x2ae   :  { %532 = vsyncpa [#allocation4], 1 }
 0x2af   :  { %534 = vsyncpa [#allocation4 + $0x1], 1 }
 0x2b0   :  { %535 = vsyncpa [#allocation5], 1 }
 0x2b1   :  { %537 = vsyncpa [#allocation5 + $0x1], 1 }
 0x2b2   :  { %538 = vsyncpa [#allocation8], 1 }
 0x2b3   :  { %540 = vsyncpa [#allocation8 + $0x1], 1 }

</bundles_post_ra>
